<compile_context>
chip_gen: v7x
topology: tpu7x:2x2x1
jax: 0.10.0
libtpu: 0.0.40
codegen_flags: <defaults>
</compile_context>

<pallas_src>
import jax
import jax.numpy as jnp
from jax.experimental import pallas as pl
from jax.experimental.pallas import tpu as pltpu


def _lanets_kernel(mad_ref, x_ref, w1t_ref, w2_ref, out_ref):
    """One (batch, spatial-tile) step of LANets spatial attention.

    mad_ref:  (B, LA)       SMEM, per-(batch, branch) MAD mask (0./1.)
    x_ref:    (C, TS)       input pixels, spatial on the lane axis
    w1t_ref:  (LA*Cmid, C)  fused conv1 weights of all branches
    w2_ref:   (LA*Cmid, 1)  conv2 weights of all branches as one column
    out_ref:  (C, TS)       x * spatial-attention mask
    """
    b = pl.program_id(0)
    la = mad_ref.shape[1]
    cmid = w2_ref.shape[0] // la

    x = x_ref[...]
    # Fused conv1 over all branches + ReLU (single MXU matmul, f32 accumulate).
    a = jnp.maximum(
        jnp.dot(w1t_ref[...], x, preferred_element_type=jnp.float32), 0.0)
    # conv2 as VPU multiply + segmented sublane reduce (no 2-lane matmul).
    wz = a * w2_ref[...].astype(jnp.float32)            # (LA*Cmid, TS)

    neg = jnp.float32(-1e30)
    z = None
    for j in range(la):                                  # LA is tiny & static
        zj = jnp.sum(wz[j * cmid:(j + 1) * cmid, :], axis=0, keepdims=True)
        # MAD folded onto the logit: masked branch -> -1e30 -> sigmoid == 0.
        zj = jnp.where(mad_ref[b, j] > 0.0, zj, neg)
        z = zj if z is None else jnp.maximum(z, zj)

    mask = jax.nn.sigmoid(z)                             # (1, TS), one EUP pass
    out_ref[...] = (x.astype(jnp.float32) * mask).astype(out_ref.dtype)


def _pick_spatial_tile(S, C, itemsize, target, vmem_budget=20 * 1024 * 1024):
    """Largest multiple of 128 dividing S, capped by `target` and a VMEM budget.

    Falls back to the full spatial extent (always a legal block dim)."""
    cap = max(128, min(target, vmem_budget // max(1, 4 * C * itemsize)))
    best = 0
    ts = 128
    while ts <= min(S, cap):
        if S % ts == 0:
            best = ts
        ts += 128
    return best if best > 0 else S


def lanets_forward(x_nchw, w1, w2, mad_mask, *, target_spatial_tile=2048):
    """x_nchw: (B, C, W, H) as in the PyTorch module.  Returns (B, C, W, H).

    w1: (LA, C, Cmid)  conv1 weights per branch (as x @ w1[j]),
    w2: (LA, Cmid, 1)  conv2 weights per branch,
    mad_mask: (B, LA)  precomputed MAD mask (0./1.).
    """
    B, C, W, H = x_nchw.shape
    LA, _, Cmid = w1.shape
    S = W * H

    # NCHW-native: merge trailing (W, H) -> S.  Free reshape, no transpose.
    x3 = x_nchw.reshape(B, C, S)

    # Fuse conv1 weights of all branches: rows [j*Cmid:(j+1)*Cmid] = branch j.
    w1t = jnp.transpose(w1, (0, 2, 1)).reshape(LA * Cmid, C).astype(x3.dtype)
    # conv2 weights as a single column (applied per branch via segmented reduce).
    w2col = w2.reshape(LA * Cmid, 1).astype(jnp.float32)
    mad = mad_mask.astype(jnp.float32)                   # (B, LA) -> SMEM

    ts = _pick_spatial_tile(S, C, x3.dtype.itemsize, target_spatial_tile)
    grid = (B, S // ts)

    # VMEM: double-buffered x & out tiles + f32 conv1 activation + weights.
    tile_bytes = C * ts * x3.dtype.itemsize
    act_bytes = LA * Cmid * ts * 4
    w_bytes = w1t.size * w1t.dtype.itemsize + w2col.size * 4
    vmem_need = 4 * tile_bytes + act_bytes + w_bytes + (1 << 20)
    vmem_limit = int(min(64 * 1024 * 1024,
                         max(32 * 1024 * 1024, 2 * vmem_need)))

    out3 = pl.pallas_call(
        _lanets_kernel,
        out_shape=jax.ShapeDtypeStruct((B, C, S), x3.dtype),
        grid_spec=pltpu.PrefetchScalarGridSpec(
            num_scalar_prefetch=1,
            grid=grid,
            in_specs=[
                pl.BlockSpec((None, C, ts), lambda b, s, mad_r: (b, 0, s)),
                pl.BlockSpec((LA * Cmid, C), lambda b, s, mad_r: (0, 0)),
                pl.BlockSpec((LA * Cmid, 1), lambda b, s, mad_r: (0, 0)),
            ],
            out_specs=pl.BlockSpec((None, C, ts), lambda b, s, mad_r: (b, 0, s)),
        ),
        compiler_params=pltpu.CompilerParams(
            dimension_semantics=("parallel", "parallel"),
            vmem_limit_bytes=vmem_limit),
    )(mad, x3, w1t, w2col)

    return out3.reshape(B, C, W, H)


def reference(x_nchw, w1, w2, mad_mask):
    """Plain-JAX reference mirroring the PyTorch LANets.forward semantics."""
    x = x_nchw.astype(jnp.float32)
    LA = w1.shape[0]
    maps = []
    for j in range(LA):
        a = jax.nn.relu(jnp.einsum('bcwh,cm->bmwh', x, w1[j]))
        s = jax.nn.sigmoid(jnp.einsum('bmwh,mo->bowh', a, w2[j]))
        maps.append(s)
    la = jnp.concatenate(maps, axis=1)                   # (B, LA, W, H)
    la = la * mad_mask[:, :, None, None]                 # MAD
    mask = jnp.max(la, axis=1, keepdims=True)            # (B, 1, W, H)
    return x * mask


def make_mad_mask(key, B, LA, p=0.6):
    # TODO(synk): torch.randperm/torch.rand RNG streams cannot be reproduced
    # bit-exactly in JAX; same distributional semantics, deterministic key.
    k1, k2 = jax.random.split(key)
    perms = jnp.stack([jax.random.permutation(jax.random.fold_in(k1, b),
                                              jnp.arange(LA)) for b in range(B)])
    u = jax.random.uniform(k2, (B, LA))
    # element is 0 iff (perm == 0) and (u < p), else 1  -- matches MAD().
    return jnp.where((perms == 0) & (u < p), 0.0, 1.0).astype(jnp.float32)


if __name__ == "__main__":
    # Small shapes consistent with the module structure.
    B, C, W, H = 2, 32, 8, 8          # x: (B, feature_dim, W, H)
    LA = 2                            # branch_num
    Cmid = C // 2                     # la_reduction_ratio = 2.0

    root = jax.random.PRNGKey(0)
    ks = jax.random.split(root, 4)

    x = jax.random.normal(ks[0], (B, C, W, H), jnp.float32)
    w1 = 0.05 * jax.random.normal(ks[1], (LA, C, Cmid), jnp.float32)   # conv1 (1x1)
    w2 = 0.05 * jax.random.normal(ks[2], (LA, Cmid, 1), jnp.float32)   # conv2 (1x1)
    mad_mask = make_mad_mask(ks[3], B, LA)                             # (B, LA)

    out = lanets_forward(x, w1, w2, mad_mask)
    out = jax.block_until_ready(out)

    ref = reference(x, w1, w2, mad_mask)
    assert out.shape == (B, C, W, H)
    assert bool(jnp.allclose(out, ref, rtol=1e-4, atol=1e-5)), "mismatch vs reference"

    print("KERNEL_OK")
</pallas_src>

<mosaic_0001>
module attributes {stable_mosaic.version = 11 : i64} {
  func.func @_lanets_kernel(%arg0: i32, %arg1: i32, %arg2: memref<2x2xf32, #tpu.memory_space<smem>>, %arg3: memref<1x32x64xf32, #tpu.memory_space<vmem>>, %arg4: memref<32x32xf32, #tpu.memory_space<vmem>>, %arg5: memref<32x1xf32, #tpu.memory_space<vmem>>, %arg6: memref<1x32x64xf32, #tpu.memory_space<vmem>>) attributes {dimension_semantics = [#tpu.dimension_semantics<parallel>, #tpu.dimension_semantics<parallel>], iteration_bounds = array<i64: 2, 1>, scalar_prefetch = 1 : i64, scratch_operands = 0 : i64, tpu.core_type = #tpu.core_type<tc>, window_params = [{transform_indices = @transform_0, window_bounds = array<i64: 1, 32, 64>}, {pipeline_mode = #tpu.pipeline_mode<synchronous>, transform_indices = @transform_1, window_bounds = array<i64: 32, 32>}, {pipeline_mode = #tpu.pipeline_mode<synchronous>, transform_indices = @transform_2, window_bounds = array<i64: 32, 1>}, {transform_indices = @transform_3, window_bounds = array<i64: 1, 32, 64>}]} {
    %c0 = arith.constant 0 : index
    %c0_0 = arith.constant 0 : index
    %c0_1 = arith.constant 0 : index
    %0 = vector.load %arg3[%c0, %c0_0, %c0_1] : memref<1x32x64xf32, #tpu.memory_space<vmem>>, vector<1x32x64xf32>
    %1 = vector.shape_cast %0 : vector<1x32x64xf32> to vector<32x64xf32>
    %c0_2 = arith.constant 0 : index
    %c0_3 = arith.constant 0 : index
    %2 = vector.load %arg4[%c0_2, %c0_3] : memref<32x32xf32, #tpu.memory_space<vmem>>, vector<32x32xf32>
    %cst = arith.constant dense<0.000000e+00> : vector<32x64xf32>
    %3 = tpu.matmul %2, %1, %cst {dimension_numbers = #tpu.dot_dimension_numbers<[1], [0], [0], [1], [0, 0, 1, 1], [], []>} : vector<32x32xf32>, vector<32x64xf32>, vector<32x64xf32> -> vector<32x64xf32>
    %cst_4 = arith.constant 0.000000e+00 : f32
    %4 = vector.broadcast %cst_4 : f32 to vector<32x64xf32>
    %5 = arith.maximumf %3, %4 : vector<32x64xf32>
    %c0_5 = arith.constant 0 : index
    %c0_6 = arith.constant 0 : index
    %6 = vector.load %arg5[%c0_5, %c0_6] : memref<32x1xf32, #tpu.memory_space<vmem>>, vector<32x1xf32>
    %7 = vector.broadcast %6 : vector<32x1xf32> to vector<32x64xf32>
    %8 = arith.mulf %5, %7 : vector<32x64xf32>
    %9 = vector.extract_strided_slice %8 {offsets = [0, 0], sizes = [16, 64], strides = [1, 1]} : vector<32x64xf32> to vector<16x64xf32>
    %cst_7 = arith.constant dense<0.000000e+00> : vector<64xf32>
    %10 = vector.multi_reduction <add>, %9, %cst_7 [0] : vector<16x64xf32> to vector<64xf32>
    %11 = vector.shape_cast %10 : vector<64xf32> to vector<1x64xf32>
    %12 = arith.index_cast %arg0 : i32 to index
    %c0_8 = arith.constant 0 : index
    %13 = memref.load %arg2[%12, %c0_8] : memref<2x2xf32, #tpu.memory_space<smem>>
    %cst_9 = arith.constant 0.000000e+00 : f32
    %14 = arith.cmpf ogt, %13, %cst_9 : f32
    %cst_10 = arith.constant -1.000000e+30 : f32
    %15 = vector.broadcast %cst_10 : f32 to vector<1x64xf32>
    %16 = arith.select %14, %11, %15 : vector<1x64xf32>
    %17 = vector.extract_strided_slice %8 {offsets = [16, 0], sizes = [16, 64], strides = [1, 1]} : vector<32x64xf32> to vector<16x64xf32>
    %cst_11 = arith.constant dense<0.000000e+00> : vector<64xf32>
    %18 = vector.multi_reduction <add>, %17, %cst_11 [0] : vector<16x64xf32> to vector<64xf32>
    %19 = vector.shape_cast %18 : vector<64xf32> to vector<1x64xf32>
    %20 = arith.index_cast %arg0 : i32 to index
    %c1 = arith.constant 1 : index
    %21 = memref.load %arg2[%20, %c1] : memref<2x2xf32, #tpu.memory_space<smem>>
    %cst_12 = arith.constant 0.000000e+00 : f32
    %22 = arith.cmpf ogt, %21, %cst_12 : f32
    %cst_13 = arith.constant -1.000000e+30 : f32
    %23 = vector.broadcast %cst_13 : f32 to vector<1x64xf32>
    %24 = arith.select %22, %19, %23 : vector<1x64xf32>
    %25 = arith.maximumf %16, %24 : vector<1x64xf32>
    %26 = arith.negf %25 : vector<1x64xf32>
    %27 = math.exp %26 : vector<1x64xf32>
    %cst_14 = arith.constant 1.000000e+00 : f32
    %28 = vector.broadcast %cst_14 : f32 to vector<1x64xf32>
    %29 = arith.addf %28, %27 : vector<1x64xf32>
    %30 = arith.divf %28, %29 : vector<1x64xf32>
    %31 = vector.broadcast %30 : vector<1x64xf32> to vector<32x64xf32>
    %32 = arith.mulf %1, %31 : vector<32x64xf32>
    %c0_15 = arith.constant 0 : index
    %c0_16 = arith.constant 0 : index
    %c0_17 = arith.constant 0 : index
    %33 = vector.load %arg6[%c0_15, %c0_16, %c0_17] : memref<1x32x64xf32, #tpu.memory_space<vmem>>, vector<1x32x64xf32>
    %34 = vector.shape_cast %33 : vector<1x32x64xf32> to vector<32x64xf32>
    %35 = vector.shape_cast %32 : vector<32x64xf32> to vector<1x32x64xf32>
    tpu.vector_store %arg6[%c0_15, %c0_16, %c0_17], %35 {strides = array<i32>} : memref<1x32x64xf32, #tpu.memory_space<vmem>>, vector<1x32x64xf32>,
    return
  }
  func.func @transform_0(%arg0: i32, %arg1: i32, %arg2: memref<2x2xf32, #tpu.memory_space<smem>>) -> (i32, i32, i32) {
    %c0_i32 = arith.constant 0 : i32
    %c0_i32_0 = arith.constant 0 : i32
    return %arg0, %c0_i32, %arg1 : i32, i32, i32
  }
  func.func @transform_1(%arg0: i32, %arg1: i32, %arg2: memref<2x2xf32, #tpu.memory_space<smem>>) -> (i32, i32) {
    %c0_i32 = arith.constant 0 : i32
    %c0_i32_0 = arith.constant 0 : i32
    %c0_i32_1 = arith.constant 0 : i32
    return %c0_i32, %c0_i32_0 : i32, i32
  }
  func.func @transform_2(%arg0: i32, %arg1: i32, %arg2: memref<2x2xf32, #tpu.memory_space<smem>>) -> (i32, i32) {
    %c0_i32 = arith.constant 0 : i32
    %c0_i32_0 = arith.constant 0 : i32
    %c0_i32_1 = arith.constant 0 : i32
    return %c0_i32, %c0_i32_0 : i32, i32
  }
  func.func @transform_3(%arg0: i32, %arg1: i32, %arg2: memref<2x2xf32, #tpu.memory_space<smem>>) -> (i32, i32, i32) {
    %c0_i32 = arith.constant 0 : i32
    %c0_i32_0 = arith.constant 0 : i32
    return %arg0, %c0_i32, %arg1 : i32, i32, i32
  }
}

</mosaic_0001>

<bundles_post_ra>
// kernel: tpu_custom_call.1
= control target key start
LH: loop header
LB: loop body
LE: loop exit
PB: predicated region body
PF: predicated region fallthrough
CT: control target
= control target key end

     0   :  { %s1026_s0 = inlined_call_operand.vmem [shape: f32[2,2], index: 0, kind: input, shape index: {}]   ;;  %s1027_s1 = inlined_call_operand.hbm [shape: f32[2,32,64], index: 1, kind: input, shape index: {}]   ;;  %s1028_s2 = inlined_call_operand.vmem [shape: f32[32,32], index: 2, kind: input, shape index: {}]   ;;  %s1029_s3 = inlined_call_operand.vmem [shape: f32[32,1], index: 3, kind: input, shape index: {}]   ;;  %s1030_s4 = inlined_call_operand.hbm [shape: f32[2,32,64], index: 4, kind: output, shape index: {}]  }
   0x1   :  { %s9_s17 = sshll.u32 %s1026_s0, 4  ;;  %s10_s17 = int_to_ptr.vmem [resolvable:$true] %s9_s17 }
   0x2   :  { %s630_s18 = scalar_lea.vmem %s10_s17, 32  ;;  %p635_p1 = scmp.lt.s32.totalorder %s10_s17, %s10_s17 }
   0x3   :  { %p631_p0 = scmp.ne.s32.totalorder %s10_s17, %s630_s18  ;;  %p636_p2 = scmp.lt.s32.totalorder %s630_s18, %s630_s18 }
   0x5   :  { %p637_p3 = por %p636_p2, %p635_p1 }
   0x7   :  { %p638_p4 = pnand %p637_p3, %p631_p0 }
   0x9   :  { %641 = shalt.err (!%p638_p4)  }
   0xa   :  { %s758_s19 = smov [#allocation3]  }
   0xb   :  { %12 = dma.vmem_to_smem %s10_s17, 32, %s758_s19, [#allocation2] }
   0xc   :  { %724 = dma.done.wait [#allocation2], 32 }
   0xd   :  { %725 = vsyncadd [#allocation2], 4294967264 }
   0xe   :  { %14 = sfence }
   0xf   :  { %15 = vsyncpa [#allocation5], 0 }
  0x10   :  { %17 = vsyncpa [#allocation5 + $0x1], 0 }
  0x11   :  { %18 = vsyncpa [#allocation6], 0 }
  0x12   :  { %20 = vsyncpa [#allocation6 + $0x1], 0  ;;  %s794_s20 = smov 0   ;;  %s796_s0 = smov 0  }
  0x13   :  { %s798_s21 = smov 0   ;;  %s800_s22 = smov 0  }
  0x14   :  { %s802_s23 = smov 0   ;;  %s804_s24 = smov 0  }
  0x15 LB: > { %s499_s25 = sadd.s32 4294967295, %s756_s24   ;;  %s500_s26 = sadd.s32 4294967294, %s756_s24   ;;  %s756_s24 = sphi %s804_s24, %s26_s24   ;;  %s752_s23 = sphi %s802_s23, %s1045_s23   ;;  %s748_s22 = sphi %s800_s22, %s1044_s22   ;;  %s744_s21 = sphi %s798_s21, %s1043_s21   ;;  %s740_s0 = sphi %s796_s0, %s1042_s0   ;;  %s736_s20 = sphi %s794_s20, %s1041_s20  }
  0x16   : > { %s38_s27 = sadd.s32 1, %s752_s23  ;;  %s47_s28 = sadd.s32 1, %s744_s21 }
  0x17   : > { %p40_p5 = scmp.ge.s32.totalorder %s38_s27, 2  ;;  %p54_p6 = scmp.ne.s32.totalorder %s744_s21, %s740_s0 }
  0x18   : > { %p55_p7 = scmp.eq.s32.totalorder %s756_s24, 0  ;;  %p60_p8 = scmp.ne.s32.totalorder %s740_s0, %s736_s20 }
  0x19   : > { %s1047_s27 = smov (%p40_p5, %s38_s27), 0  ;;  %p61_p10 = scmp.eq.s32.totalorder %s499_s25, 0 }
  0x1a   : > { %p835_p9 = por %p55_p7, %p54_p6  ;;  %s42_s30 = ssub.s32 %s752_s23, %s1047_s27 }
  0x1b   : > { %p128_p11 = scmp.eq.s32.totalorder %s499_s25, 1  ;;  %p45_p12 = scmp.eq.s32.totalorder %s42_s30, 0 }
  0x1c   : > { %p841_p13 = por %p61_p10, %p60_p8  ;;  %p134_p1 = scmp.eq.s32.totalorder %s500_s26, 1 }
  0x1d   : > { %p845_p0 = por %p128_p11, %p54_p6  ;;  %p568_p4 = scmp.lt.s32.totalorder %s756_s24, 2 }
  0x1e   : > { %s850_s7 = scalar_select %p45_p12, %s744_s21, %s47_s28  }
  0x1f   : > { %s1034_s6 = scalar_select %p845_p0, 1, 0 }
  0x20   : > { %p852_p2 = por %p134_p1, %p60_p8  ;;  %s160_s9 = sand.u32 1, %s744_s21  }
  0x21   : > { %s503_s10 = sshll.u32 %s160_s9, 5  ;;  %s520_s11 = sshll.u32 %s752_s23, 9 }
  0x22   : > { %s1035_s8 = scalar_select %p852_p2, 1, 0 }
  0x23   : > { %s863_s14 = scalar_lea.hbm %s1027_s1, %s520_s11  ;;  %s164_s15 = scalar_lea.vmem [#allocation4], %s503_s10 }
  0x24   : > { %s172_s16 = sshll.u32 %s164_s15, 4  ;;  %p869_p5 = pnand %p568_p4, %p835_p9  ;;  %s865_s16 = int_to_ptr.vmem [resolvable:$true] %s172_s16 }
  0x25   : > { %s874_s18 = scalar_lea.sflag [#allocation5], %s160_s9  ;;  %s642_s19 = scalar_lea.hbm %s863_s14, 512 }
  0x26   : > { %p643_p7 = scmp.ne.s32.totalorder %s863_s14, %s642_s19  ;;  %p644_p8 = pneg %p869_p5 }
  0x27   : > { %s647_s28 = scalar_lea.hbm %s1027_s1, 1024  ;;  %p648_p9 = scmp.lt.u32.totalorder %s863_s14, %s1027_s1 }
  0x28   : > { %p645_p10 = pnand %p644_p8, %p643_p7  ;;  %p649_p12 = scmp.lt.u32.totalorder %s647_s28, %s642_s19 }
  0x29   : > { %p651_p4 = scmp.lt.u32.totalorder %s642_s19, %s863_s14 }
  0x2a   : > { %p646_p11 = pneg %p645_p10  ;;  %p650_p1 = por %p649_p12, %p648_p9 }
  0x2c   : > { %p652_p3 = por %p651_p4, %p650_p1 }
  0x2e   : > { %p653_p6 = pnand %p652_p3, %p646_p11 }
  0x30   : > { %656 = shalt.err (!%p653_p6)
}
  0x31   : > { %s657_s9 = scalar_lea.vmem %s865_s16, 512  ;;  %s759_s10 = smov [#allocation4]  }
  0x32   : > { %p658_p7 = scmp.ne.s32.totalorder %s865_s16, %s657_s9  ;;  %s662_s11 = sshll.u32 %s759_s10, 4  ;;  %s663_s11 = int_to_ptr.vmem [resolvable:$false] %s662_s11 }
  0x33   : > { %s664_s12 = scalar_lea.vmem %s663_s11, 1024  ;;  %p665_p0 = scmp.lt.s32.totalorder %s865_s16, %s663_s11 }
  0x34   : > { %p660_p10 = pnand %p658_p7, %p644_p8  ;;  %p666_p9 = scmp.lt.s32.totalorder %s664_s12, %s657_s9 }
  0x36   : > { %p661_p2 = pneg %p660_p10  ;;  %p667_p12 = por %p666_p9, %p665_p0 }
  0x38   : > { %p668_p1 = pnand %p667_p12, %p661_p2 }
  0x3a   : > { %671 = shalt.err (!%p668_p1)
}
  0x3b   : > { %s760_s13 = smov 128   ;;  %s761_s15 = smov 8  }
  0x3c   : > { %563 = dma.hbm_to_vmem [thread:$0]  (!%p869_p5), %s863_s14, 512, %s865_s16, %s874_s18, %s760_s13, %s760_s13, %s761_s15  }
  0x3d   : > { %p180_p3 = scmp.lt.s32.totalorder %s756_s24, 3  ;;  %p1037_p6 = scmp.ge.s32.totalorder %s756_s24, 1 }
  0x3f   : > { %p181_p8 = pnand %p1037_p6, %p180_p3 }
  0x40   : > { %s906_s19 = sand.u32 (!%p181_p8), 1, %s740_s0  }
  0x41   : > { %184 = sbr.rel (%p181_p8) target bundleno = 364 (0x16c), region = 32  ;;  %s507_s25 = sshll.u32 (!%p181_p8), %s906_s19, 5 }
  0x42   : > { %s187_s26 = scalar_lea.sflag (!%p181_p8), [#allocation5], %s906_s19  ;;  %s190_s28 = scalar_lea.vmem (!%p181_p8), [#allocation4], %s507_s25 }
  0x48   : > { %727 = dma.done.wait (%p841_p13), %s187_s26, 512  }
  0x49   : > { %729 = vsyncadd (%p841_p13), %s187_s26, 4294966784  ;;  %v762_v0 = vmov 0   ;;  %vm221_vm0 = vcmask 261120   ;;  %v916_v1 = vld [vmem:[%s190_s28] sm:$0xff]  ;;  %v918_v2 = vld [vmem:[%s190_s28 + $0x8] sm:$0xff]  ;;  %s513_s16 = sshll.u32 %s748_s22, 7 }
  0x4a   : > { %625 = vset.pattern.permute.xlu1 %v762_v0  ;;  %624 = vset.pattern.permute.xlu0 %v762_v0  ;;  %v920_v3 = vld [vmem:[%s190_s28 + $0x10] sm:$0xff]  ;;  %v544_v4 = vpack.c.bf16 %v918_v2, %v916_v1  ;;  %v924_v5 = vld [vmem:[%s190_s28 + $0x18] sm:$0xff]  ;;  %v217_v6 = vld [vmem:[%s1028_s2] sm:$0xff]  ;;  %s377_s5 = sadd.s32 1, %s513_s16  ;;  %s362_s17 = sld [smem:[#allocation3 + %s513_s16]]  ;;  %vm351_vm1 = vcmask 523264  }
  0x4b   : > { %v219_v7 = vld [vmem:[%s1028_s2 + $0x10] sm:$0xff]  ;;  %v548_v8 = vpack.c.bf16 %v924_v5, %v920_v3  ;;  %538 = vmatprep.mubr.msk.f32.mxu0 %vm221_vm0, %v217_v6  ;;  %v323_v10 = vld [vmem:[%s1029_s3] sm:$0xff]  ;;  %v326_v11 = vld [vmem:[%s1029_s3 + $0x18] sm:$0xff]  ;;  %s378_s18 = sld [smem:[#allocation3 + %s377_s5]]  ;;  %s521_s9 = sshll.u32 %s748_s22, 9 }
  0x4c   : > { %541 = vmatprep.mubr.msk.f32.mxu1 %vm221_vm0, %v219_v7  ;;  %545 = vmatprep.subr.bf16.mxu0 %v544_v4  ;;  %v325_v9 = vld [vmem:[%s1029_s3 + $0x10] sm:$0xff]  ;;  %v324_v12 = vld [vmem:[%s1029_s3 + $0x8] sm:$0xff]  ;;  %v220_v14 = vld [vmem:[%s1028_s2 + $0x18] sm:$0xff]  ;;  %s212_s10 = scalar_lea.vmem [#allocation7], %s507_s25  ;;  %s967_s15 = scalar_lea.hbm %s1030_s4, %s521_s9 }
  0x4d   : > { %552 = vmatprep.subr.bf16.mxu1 %v544_v4  ;;  %547 = vmatpush3.bf16.msra.mxu0 %v544_v4  ;;  %v218_v13 = vld [vmem:[%s1028_s2 + $0x8] sm:$0xff]  ;;  %s414_s11 = sshll.u32 %s212_s10, 4  ;;  %s400_s22 = scalar_lea.sflag [#allocation6], %s906_s19  ;;  %s969_s11 = int_to_ptr.vmem [resolvable:$true] %s414_s11 }
  0x4e   : > { %554 = vmatpush3.bf16.msra.mxu1 %v544_v4  ;;  %549 = vmatprep.subr.bf16.mxu0 %v548_v8  ;;  %s672_s25 = scalar_lea.vmem %s969_s11, 512  ;;  %p1038_p5 = scmp.ne.s32.totalorder %s1034_s6, 0 }
  0x4f   : > { %553 = vmatprep.subr.bf16.mxu1 %v548_v8  ;;  %339 = vperm.xlu1 %625, %v325_v9   ;;  %p673_p2 = scmp.ne.s32.totalorder %s969_s11, %s672_s25  ;;  %s763_s26 = smov [#allocation7]  }
  0x50   : > { %329 = vperm.xlu0 %624, %v323_v10   ;;  %p363_p13 = scmp.gt.f32.partialorder %s362_s17, 0.0  ;;  %s676_s28 = sshll.u32 %s763_s26, 4  ;;  %s677_s28 = int_to_ptr.vmem [resolvable:$false] %s676_s28 }
  0x51   : > { %551 = vmatpush3.bf16.msra.mxu0 %v548_v8  ;;  %p379_p0 = scmp.gt.f32.partialorder %s378_s18, 0.0  ;;  %p674_p11 = pnand %p673_p2, %p1038_p5 }
  0x52   : > { %555 = vmatpush3.bf16.msra.mxu1 %v548_v8  ;;  %s364_s29 = scalar_select %p363_p13, 1, 0 }
  0x53   : > { %344 = vperm.xlu1 %625, %v326_v11   ;;  %s380_s30 = scalar_select %p379_p0, 1, 0 }
  0x54   : > { %334 = vperm.xlu0 %624, %v324_v12   ;;  %539 = vmatmul.mubr.msk.f32.vlgmr.msra.gmra.mrb[0].mxu0 %vm221_vm0, %v218_v13  ;;  %v365_v44 = vstv %s364_s29  ;;  %p675_p4 = pneg %p674_p11  ;;  %s678_s14 = scalar_lea.vmem %s677_s28, 1024 }
  0x55   : > { %542 = vmatmul.mubr.msk.f32.vlgmr.msra.gmra.mrb[0].mxu1 %vm221_vm0, %v220_v14  ;;  %v381_v46 = vstv %s380_s30  ;;  %vm366_vm2 = vcmp.eq.s32.totalorder %v365_v44, 1  ;;  %p679_p7 = scmp.lt.s32.totalorder %s969_s11, %s677_s28  ;;  %p680_p10 = scmp.lt.s32.totalorder %s678_s14, %s672_s25 }
  0x56   : > { %vm382_vm3 = vcmp.eq.s32.totalorder %v381_v46, 1 }
  0x57   : > { %p681_p9 = por %p680_p10, %p679_p7 }
  0x59   : > { %p682_p12 = pnand %p681_p9, %p675_p4 }
  0xce   : > { %v340_v15 = vpop.permute.xlu1 %339 }
  0xcf   : > { %v330_v16 = vpop.permute.xlu0 %329 }
  0xd2   : > { %v345_v23 = vpop.permute.xlu1 %344 }
  0xd3   : > { %v335_v24 = vpop.permute.xlu0 %334 }
 0x127   : > { %v540_v17 = vpop.f32.mrb[0].mxu0 }
 0x128   : > { %v543_v18 = vpop.f32.mrb[0].mxu1  ;;  %v320_v19 = vmax.f32 %v540_v17, 0.0  ;;  %v300_v21 = vpop.f32.mrb[1].mxu0 }
 0x129   : > { %v322_v20 = vmax.f32 %v543_v18, 0.0  ;;  %v310_v22 = vpop.f32.mrb[1].mxu1  ;;  %v319_v25 = vmax.f32 %v300_v21, 0.0 }
 0x12a   : > { %v321_v26 = vmax.f32 %v310_v22, 0.0  ;;  %v348_v27 = vmul.f32 %v335_v24, %v320_v19 }
 0x12b   : > { %v350_v28 = vmul.f32 %v345_v23, %v322_v20  ;;  %v347_v29 = vmul.f32 %v330_v16, %v319_v25 }
 0x12c   : > { %v349_v30 = vmul.f32 %v340_v15, %v321_v26  ;;  %v353_v31 = vsel %vm351_vm1, %v348_v27, 0.0 }
 0x12d   : > { %v369_v32 = vsel %vm351_vm1, %v350_v28, 0.0  ;;  %v352_v33 = vsel %vm351_vm1, %v347_v29, 0.0 }
 0x12e   : > { %v368_v34 = vsel %vm351_vm1, %v349_v30, 0.0  ;;  %v354_v35 = vadd.f32 %v353_v31, %v352_v33 }
 0x12f   : > { %v370_v36 = vadd.f32 %v369_v32, %v368_v34 }
 0x130   : > { %v355_v37 = vrot.slane %v354_v35, 4 }
 0x131   : > { %v371_v38 = vrot.slane %v370_v36, 4 }
 0x132   : > { %v356_v39 = vadd.f32 %v355_v37, %v354_v35 }
 0x133   : > { %v372_v40 = vadd.f32 %v371_v38, %v370_v36 }
 0x134   : > { %v357_v41 = vrot.slane %v356_v39, 2 }
 0x135   : > { %v373_v42 = vrot.slane %v372_v40, 2 }
 0x136   : > { %v358_v43 = vadd.f32 %v357_v41, %v356_v39 }
 0x137   : > { %v374_v45 = vadd.f32 %v373_v42, %v372_v40 }
 0x138   : > { %v359_v47 = vrot.slane %v358_v43, 1 }
 0x139   : > { %v375_v48 = vrot.slane %v374_v45, 1 }
 0x13a   : > { %v360_v49 = vadd.f32 %v359_v47, %v358_v43 }
 0x13b   : > { %v376_v50 = vadd.f32 %v375_v48, %v374_v45 }
 0x13c   : > { %v367_v51 = vsel %vm366_vm2, %v360_v49, -1e+30 }
 0x13d   : > { %v383_v52 = vsel %vm382_vm3, %v376_v50, -1e+30 }
 0x13e   : > { %v384_v53 = vmax.f32 %v367_v51, %v383_v52 }
 0x140   : > { %v514_v54 = vmul.f32 -1.442695, %v384_v53 }
 0x142   : > { %626 = vpow2.f32 %v514_v54 }
 0x14c   : > { %v627_v55 = vpop.eup %626 }
 0x14d   : > { %v388_v56 = vadd.f32 1.0, %v627_v55 }
 0x14f   : > { %628 = vrcp.f32 %v388_v56 }
 0x159   : > { %v629_v57 = vpop.eup %628 }
 0x15a   : > { %v391_v58 = vmul.f32 %v629_v57, %v916_v1  ;;  %v392_v59 = vmul.f32 %v629_v57, %v918_v2  ;;  %v393_v60 = vmul.f32 %v629_v57, %v920_v3  ;;  %v394_v61 = vmul.f32 %v629_v57, %v924_v5 }
 0x15c   : > { %395 = vst.msk [vmem:[%s212_s10] sm:$0xff] %vm351_vm1, %v391_v58  ;;  %396 = vst.msk [vmem:[%s212_s10 + $0x8] sm:$0xff] %vm351_vm1, %v392_v59 }
 0x15d   : > { %397 = vst.msk [vmem:[%s212_s10 + $0x10] sm:$0xff] %vm351_vm1, %v393_v60  ;;  %398 = vst.msk [vmem:[%s212_s10 + $0x18] sm:$0xff] %vm351_vm1, %v394_v61 }
 0x15e   : > { %685 = shalt.err (!%p682_p12)
}
 0x15f   : > { %s686_s16 = scalar_lea.hbm %s967_s15, 512  ;;  %s690_s18 = scalar_lea.hbm %s1030_s4, 1024 }
 0x160   : > { %p687_p1 = scmp.ne.s32.totalorder %s967_s15, %s686_s16  ;;  %p691_p8 = scmp.lt.u32.totalorder %s967_s15, %s1030_s4 }
 0x161   : > { %p692_p13 = scmp.lt.u32.totalorder %s690_s18, %s686_s16  ;;  %p694_p2 = scmp.lt.u32.totalorder %s686_s16, %s967_s15 }
 0x162   : > { %p688_p3 = pnand %p687_p1, %p1038_p5 }
 0x163   : > { %p693_p0 = por %p692_p13, %p691_p8 }
 0x164   : > { %p689_p6 = pneg %p688_p3 }
 0x165   : > { %p695_p11 = por %p694_p2, %p693_p0 }
 0x167   : > { %p696_p4 = pnand %p695_p11, %p689_p6 }
 0x169   : > { %699 = shalt.err (!%p696_p4)
}
 0x16a   : > { %s764_s9 = smov 128   ;;  %s765_s10 = smov 8  }
 0x16b   : > { %558 = dma.vmem_to_hbm [thread:$0]  (%p1038_p5), %s969_s11, 512, %s967_s15, %s400_s22, %s764_s9, %s764_s9, %s765_s10  }
 0x16c PF: > { %s429_s12 = sand.u32 1, %s736_s20   ;;  %p1039_p7 = scmp.ne.s32.totalorder %s1035_s8, 0 }
 0x16d   : > { %p1040_p10 = scmp.ge.s32.totalorder %s756_s24, 2  ;;  %s430_s13 = scalar_lea.sflag [#allocation6], %s429_s12 }
 0x16f   : > { %p565_p9 = pnand %p1040_p10, %p1039_p7 }
 0x171   : > { %731 = dma.done.wait (!%p565_p9), %s430_s13, 512  }
 0x172   : > { %733 = vsyncadd (!%p565_p9), %s430_s13, 4294966784  ;;  %s26_s24 = sadd.s32 1, %s756_s24   ;;  %s1041_s20 = smov %s740_s0 }
 0x173   : > { %p23_p12 = scmp.ge.s32.totalorder %s26_s24, 4   ;;  %s1042_s0 = smov %s744_s21 }
 0x174   : > { %s1043_s21 = smov %s850_s7  ;;  %s1044_s22 = smov %s752_s23 }
 0x175   : > { %s1045_s23 = smov %s1047_s27  ;;  %25 = sbr.rel (!%p23_p12) target bundleno = 21 (0x15), region = 77 }
 0x17c   :  { %435 = vsyncpa [#allocation5], 1 }
 0x17d   :  { %437 = vsyncpa [#allocation5 + $0x1], 1 }
 0x17e   :  { %438 = vsyncpa [#allocation6], 1 }
 0x17f   :  { %440 = vsyncpa [#allocation6 + $0x1], 1 }

</bundles_post_ra>
